<compile_context>
chip_gen: v7x
topology: tpu7x:2x2x1
jax: 0.10.0
libtpu: 0.0.40
codegen_flags: <defaults>
</compile_context>

<pallas_src>
import jax
import jax.numpy as jnp
from jax.experimental import pallas as pl
from jax.experimental.pallas import tpu as pltpu


def hopnet_kernel(x_ref,
                  w1_ref, b1_ref,
                  w2_ref, b2_ref,
                  w3_ref, b3_ref,
                  w4_ref, b4_ref,
                  out_ref):
    x = x_ref[...]                                    # (3, TB) f32

    # Layer 1 (in=3): K=3 is a terrible MXU fill -> three VPU broadcast FMAs.
    w1 = w1_ref[...]                                  # (64, 3) f32
    h1 = (w1[:, 0:1] * x[0:1, :]
          + w1[:, 1:2] * x[1:2, :]
          + w1[:, 2:3] * x[2:3, :]
          + b1_ref[...])                              # (64, TB) f32
    h1 = jnp.maximum(h1, 0.0)

    # Layer 2: (128,64) @ (64,TB) on the MXU, bf16 inputs, f32 accumulation.
    h2 = jnp.dot(w2_ref[...], h1.astype(jnp.bfloat16),
                 preferred_element_type=jnp.float32) + b2_ref[...]
    h2 = jnp.maximum(h2, 0.0)                         # (128, TB)

    # Layer 3: (64,128) @ (128,TB)
    h3 = jnp.dot(w3_ref[...], h2.astype(jnp.bfloat16),
                 preferred_element_type=jnp.float32) + b3_ref[...]
    h3 = jnp.maximum(h3, 0.0)                         # (64, TB)

    # Layer 4 (no ReLU): (3,64) @ (64,TB)
    out = jnp.dot(w4_ref[...], h3.astype(jnp.bfloat16),
                  preferred_element_type=jnp.float32) + b4_ref[...]
    out_ref[...] = out.astype(out_ref.dtype)          # (3, TB)


def _round_up(n, m):
    return ((n + m - 1) // m) * m


def hopnet_forward(x, params, tb=1024):
    """x: (B, 3) float32. params: PyTorch-style weights [out,in], biases [out,1].

    Returns (B, 3) float32.
    """
    B = x.shape[0]
    # Lane-dense batch tile: multiple of 128, capped so small batches don't over-pad.
    tb = min(tb, _round_up(max(B, 1), 128))
    B_pad = _round_up(B, tb)

    if B_pad != B:
        x = jnp.pad(x, ((0, B_pad - B), (0, 0)))
    x_t = x.T                                          # (3, B_pad) feature-major

    # Weights for the MXU layers are cast to bf16 once here; layer-1 weight and
    # all biases stay f32 (VPU / accumulator path).
    w1 = params["w1"].astype(jnp.float32)              # (64, 3)
    b1 = params["b1"].astype(jnp.float32)              # (64, 1)
    w2 = params["w2"].astype(jnp.bfloat16)             # (128, 64)
    b2 = params["b2"].astype(jnp.float32)              # (128, 1)
    w3 = params["w3"].astype(jnp.bfloat16)             # (64, 128)
    b3 = params["b3"].astype(jnp.float32)              # (64, 1)
    w4 = params["w4"].astype(jnp.bfloat16)             # (3, 64)
    b4 = params["b4"].astype(jnp.float32)              # (3, 1)
    consts = (w1, b1, w2, b2, w3, b3, w4, b4)

    grid = (B_pad // tb,)

    def const_spec(a):
        # Constant index_map: block never changes across the grid -> stays VMEM-resident.
        return pl.BlockSpec(a.shape, lambda i: tuple(0 for _ in a.shape))

    x_spec = pl.BlockSpec((3, tb), lambda i: (0, i))
    out_spec = pl.BlockSpec((3, tb), lambda i: (0, i))

    flops = 2 * B_pad * (3 * 64 + 64 * 128 + 128 * 64 + 64 * 3)
    weight_bytes = sum(int(a.size) * a.dtype.itemsize for a in consts)
    bytes_accessed = B_pad * 3 * 4 * 2 + weight_bytes

    out_t = pl.pallas_call(
        hopnet_kernel,
        out_shape=jax.ShapeDtypeStruct((3, B_pad), jnp.float32),
        grid=grid,
        in_specs=[x_spec] + [const_spec(a) for a in consts],
        out_specs=out_spec,
        compiler_params=pltpu.CompilerParams(
            dimension_semantics=("parallel",)),
        cost_estimate=pl.CostEstimate(
            flops=flops, transcendentals=0, bytes_accessed=bytes_accessed),
    )(x_t, *consts)

    return out_t.T[:B]                                 # back to (B, 3)


def init_params(key):
    """Deterministic init matching nn.Linear (PyTorch layout: W [out,in], b [out,1])."""
    dims = [(3, 64), (64, 128), (128, 64), (64, 3)]
    params = {}
    for i, (fan_in, fan_out) in enumerate(dims, start=1):
        key, kw, kb = jax.random.split(key, 3)
        bound = 1.0 / jnp.sqrt(fan_in)
        params[f"w{i}"] = jax.random.uniform(
            kw, (fan_out, fan_in), jnp.float32, -bound, bound)
        params[f"b{i}"] = jax.random.uniform(
            kb, (fan_out, 1), jnp.float32, -bound, bound)
    return params


def hopnet_ref(x, params):
    """Pure-JAX f32 reference (true module semantics)."""
    h = jnp.maximum(x @ params["w1"].T + params["b1"].T, 0.0)
    h = jnp.maximum(h @ params["w2"].T + params["b2"].T, 0.0)
    h = jnp.maximum(h @ params["w3"].T + params["b3"].T, 0.0)
    return h @ params["w4"].T + params["b4"].T


if __name__ == "__main__":
    key = jax.random.PRNGKey(0)
    key, kx = jax.random.split(key)

    B = 8  # small batch of 3-D points
    x = jax.random.normal(kx, (B, 3), dtype=jnp.float32)
    params = init_params(key)

    out = hopnet_forward(x, params)
    out = jax.block_until_ready(out)

    ref = hopnet_ref(x, params)
    assert out.shape == (B, 3)
    # Kernel runs layers 2-4 in bf16 (f32 accumulation) -> loosened tolerance vs f32 ref.
    assert jnp.allclose(out, ref, atol=5e-2, rtol=5e-2), "mismatch vs reference"

    print("KERNEL_OK")
</pallas_src>

<mosaic_0001>
module attributes {stable_mosaic.version = 11 : i64} {
  func.func @hopnet_kernel(%arg0: i32, %arg1: memref<3x128xf32, #tpu.memory_space<vmem>>, %arg2: memref<64x3xf32, #tpu.memory_space<vmem>>, %arg3: memref<64x1xf32, #tpu.memory_space<vmem>>, %arg4: memref<128x64xbf16, #tpu.memory_space<vmem>>, %arg5: memref<128x1xf32, #tpu.memory_space<vmem>>, %arg6: memref<64x128xbf16, #tpu.memory_space<vmem>>, %arg7: memref<64x1xf32, #tpu.memory_space<vmem>>, %arg8: memref<3x64xbf16, #tpu.memory_space<vmem>>, %arg9: memref<3x1xf32, #tpu.memory_space<vmem>>, %arg10: memref<3x128xf32, #tpu.memory_space<vmem>>) attributes {dimension_semantics = [#tpu.dimension_semantics<parallel>], iteration_bounds = array<i64: 1>, scalar_prefetch = 0 : i64, scratch_operands = 0 : i64, tpu.core_type = #tpu.core_type<tc>, window_params = [{transform_indices = @transform_0, window_bounds = array<i64: 3, 128>}, {pipeline_mode = #tpu.pipeline_mode<synchronous>, transform_indices = @transform_1, window_bounds = array<i64: 64, 3>}, {pipeline_mode = #tpu.pipeline_mode<synchronous>, transform_indices = @transform_2, window_bounds = array<i64: 64, 1>}, {pipeline_mode = #tpu.pipeline_mode<synchronous>, transform_indices = @transform_3, window_bounds = array<i64: 128, 64>}, {pipeline_mode = #tpu.pipeline_mode<synchronous>, transform_indices = @transform_4, window_bounds = array<i64: 128, 1>}, {pipeline_mode = #tpu.pipeline_mode<synchronous>, transform_indices = @transform_5, window_bounds = array<i64: 64, 128>}, {pipeline_mode = #tpu.pipeline_mode<synchronous>, transform_indices = @transform_6, window_bounds = array<i64: 64, 1>}, {pipeline_mode = #tpu.pipeline_mode<synchronous>, transform_indices = @transform_7, window_bounds = array<i64: 3, 64>}, {pipeline_mode = #tpu.pipeline_mode<synchronous>, transform_indices = @transform_8, window_bounds = array<i64: 3, 1>}, {transform_indices = @transform_9, window_bounds = array<i64: 3, 128>}]} {
    %c0 = arith.constant 0 : index
    %c0_0 = arith.constant 0 : index
    %0 = vector.load %arg1[%c0, %c0_0] : memref<3x128xf32, #tpu.memory_space<vmem>>, vector<3x128xf32>
    %c0_1 = arith.constant 0 : index
    %c0_2 = arith.constant 0 : index
    %1 = vector.load %arg2[%c0_1, %c0_2] : memref<64x3xf32, #tpu.memory_space<vmem>>, vector<64x3xf32>
    %2 = vector.extract_strided_slice %1 {offsets = [0, 0], sizes = [64, 1], strides = [1, 1]} : vector<64x3xf32> to vector<64x1xf32>
    %3 = vector.extract_strided_slice %0 {offsets = [0, 0], sizes = [1, 128], strides = [1, 1]} : vector<3x128xf32> to vector<1x128xf32>
    %4 = vector.broadcast %2 : vector<64x1xf32> to vector<64x128xf32>
    %5 = vector.broadcast %3 : vector<1x128xf32> to vector<64x128xf32>
    %6 = arith.mulf %4, %5 : vector<64x128xf32>
    %7 = vector.extract_strided_slice %1 {offsets = [0, 1], sizes = [64, 1], strides = [1, 1]} : vector<64x3xf32> to vector<64x1xf32>
    %8 = vector.extract_strided_slice %0 {offsets = [1, 0], sizes = [1, 128], strides = [1, 1]} : vector<3x128xf32> to vector<1x128xf32>
    %9 = vector.broadcast %7 : vector<64x1xf32> to vector<64x128xf32>
    %10 = vector.broadcast %8 : vector<1x128xf32> to vector<64x128xf32>
    %11 = arith.mulf %9, %10 : vector<64x128xf32>
    %12 = arith.addf %6, %11 : vector<64x128xf32>
    %13 = vector.extract_strided_slice %1 {offsets = [0, 2], sizes = [64, 1], strides = [1, 1]} : vector<64x3xf32> to vector<64x1xf32>
    %14 = vector.extract_strided_slice %0 {offsets = [2, 0], sizes = [1, 128], strides = [1, 1]} : vector<3x128xf32> to vector<1x128xf32>
    %15 = vector.broadcast %13 : vector<64x1xf32> to vector<64x128xf32>
    %16 = vector.broadcast %14 : vector<1x128xf32> to vector<64x128xf32>
    %17 = arith.mulf %15, %16 : vector<64x128xf32>
    %18 = arith.addf %12, %17 : vector<64x128xf32>
    %c0_3 = arith.constant 0 : index
    %c0_4 = arith.constant 0 : index
    %19 = vector.load %arg3[%c0_3, %c0_4] : memref<64x1xf32, #tpu.memory_space<vmem>>, vector<64x1xf32>
    %20 = vector.broadcast %19 : vector<64x1xf32> to vector<64x128xf32>
    %21 = arith.addf %18, %20 : vector<64x128xf32>
    %cst = arith.constant 0.000000e+00 : f32
    %22 = vector.broadcast %cst : f32 to vector<64x128xf32>
    %23 = arith.maximumf %21, %22 : vector<64x128xf32>
    %c0_5 = arith.constant 0 : index
    %c0_6 = arith.constant 0 : index
    %24 = vector.load %arg4[%c0_5, %c0_6] : memref<128x64xbf16, #tpu.memory_space<vmem>>, vector<128x64xbf16>
    %25 = arith.truncf %23 : vector<64x128xf32> to vector<64x128xbf16>
    %cst_7 = arith.constant dense<0.000000e+00> : vector<128x128xf32>
    %26 = tpu.matmul %24, %25, %cst_7 {dimension_numbers = #tpu.dot_dimension_numbers<[1], [0], [0], [1], [0, 0, 1, 1], [], []>} : vector<128x64xbf16>, vector<64x128xbf16>, vector<128x128xf32> -> vector<128x128xf32>
    %c0_8 = arith.constant 0 : index
    %c0_9 = arith.constant 0 : index
    %27 = vector.load %arg5[%c0_8, %c0_9] : memref<128x1xf32, #tpu.memory_space<vmem>>, vector<128x1xf32>
    %28 = vector.broadcast %27 : vector<128x1xf32> to vector<128x128xf32>
    %29 = arith.addf %26, %28 : vector<128x128xf32>
    %cst_10 = arith.constant 0.000000e+00 : f32
    %30 = vector.broadcast %cst_10 : f32 to vector<128x128xf32>
    %31 = arith.maximumf %29, %30 : vector<128x128xf32>
    %c0_11 = arith.constant 0 : index
    %c0_12 = arith.constant 0 : index
    %32 = vector.load %arg6[%c0_11, %c0_12] : memref<64x128xbf16, #tpu.memory_space<vmem>>, vector<64x128xbf16>
    %33 = arith.truncf %31 : vector<128x128xf32> to vector<128x128xbf16>
    %cst_13 = arith.constant dense<0.000000e+00> : vector<64x128xf32>
    %34 = tpu.matmul %32, %33, %cst_13 {dimension_numbers = #tpu.dot_dimension_numbers<[1], [0], [0], [1], [0, 0, 1, 1], [], []>} : vector<64x128xbf16>, vector<128x128xbf16>, vector<64x128xf32> -> vector<64x128xf32>
    %c0_14 = arith.constant 0 : index
    %c0_15 = arith.constant 0 : index
    %35 = vector.load %arg7[%c0_14, %c0_15] : memref<64x1xf32, #tpu.memory_space<vmem>>, vector<64x1xf32>
    %36 = vector.broadcast %35 : vector<64x1xf32> to vector<64x128xf32>
    %37 = arith.addf %34, %36 : vector<64x128xf32>
    %cst_16 = arith.constant 0.000000e+00 : f32
    %38 = vector.broadcast %cst_16 : f32 to vector<64x128xf32>
    %39 = arith.maximumf %37, %38 : vector<64x128xf32>
    %c0_17 = arith.constant 0 : index
    %c0_18 = arith.constant 0 : index
    %40 = vector.load %arg8[%c0_17, %c0_18] : memref<3x64xbf16, #tpu.memory_space<vmem>>, vector<3x64xbf16>
    %41 = arith.truncf %39 : vector<64x128xf32> to vector<64x128xbf16>
    %cst_19 = arith.constant dense<0.000000e+00> : vector<3x128xf32>
    %42 = tpu.matmul %40, %41, %cst_19 {dimension_numbers = #tpu.dot_dimension_numbers<[1], [0], [0], [1], [0, 0, 1, 1], [], []>} : vector<3x64xbf16>, vector<64x128xbf16>, vector<3x128xf32> -> vector<3x128xf32>
    %c0_20 = arith.constant 0 : index
    %c0_21 = arith.constant 0 : index
    %43 = vector.load %arg9[%c0_20, %c0_21] : memref<3x1xf32, #tpu.memory_space<vmem>>, vector<3x1xf32>
    %44 = vector.broadcast %43 : vector<3x1xf32> to vector<3x128xf32>
    %45 = arith.addf %42, %44 : vector<3x128xf32>
    %c0_22 = arith.constant 0 : index
    %c0_23 = arith.constant 0 : index
    %46 = vector.load %arg10[%c0_22, %c0_23] : memref<3x128xf32, #tpu.memory_space<vmem>>, vector<3x128xf32>
    tpu.vector_store %arg10[%c0_22, %c0_23], %45 {strides = array<i32>} : memref<3x128xf32, #tpu.memory_space<vmem>>, vector<3x128xf32>,
    return
  }
  func.func @transform_0(%arg0: i32) -> (i32, i32) {
    %c0_i32 = arith.constant 0 : i32
    %c0_i32_0 = arith.constant 0 : i32
    return %c0_i32, %arg0 : i32, i32
  }
  func.func @transform_1(%arg0: i32) -> (i32, i32) {
    %c0_i32 = arith.constant 0 : i32
    %c0_i32_0 = arith.constant 0 : i32
    %c0_i32_1 = arith.constant 0 : i32
    return %c0_i32, %c0_i32_0 : i32, i32
  }
  func.func @transform_2(%arg0: i32) -> (i32, i32) {
    %c0_i32 = arith.constant 0 : i32
    %c0_i32_0 = arith.constant 0 : i32
    %c0_i32_1 = arith.constant 0 : i32
    return %c0_i32, %c0_i32_0 : i32, i32
  }
  func.func @transform_3(%arg0: i32) -> (i32, i32) {
    %c0_i32 = arith.constant 0 : i32
    %c0_i32_0 = arith.constant 0 : i32
    %c0_i32_1 = arith.constant 0 : i32
    return %c0_i32, %c0_i32_0 : i32, i32
  }
  func.func @transform_4(%arg0: i32) -> (i32, i32) {
    %c0_i32 = arith.constant 0 : i32
    %c0_i32_0 = arith.constant 0 : i32
    %c0_i32_1 = arith.constant 0 : i32
    return %c0_i32, %c0_i32_0 : i32, i32
  }
  func.func @transform_5(%arg0: i32) -> (i32, i32) {
    %c0_i32 = arith.constant 0 : i32
    %c0_i32_0 = arith.constant 0 : i32
    %c0_i32_1 = arith.constant 0 : i32
    return %c0_i32, %c0_i32_0 : i32, i32
  }
  func.func @transform_6(%arg0: i32) -> (i32, i32) {
    %c0_i32 = arith.constant 0 : i32
    %c0_i32_0 = arith.constant 0 : i32
    %c0_i32_1 = arith.constant 0 : i32
    return %c0_i32, %c0_i32_0 : i32, i32
  }
  func.func @transform_7(%arg0: i32) -> (i32, i32) {
    %c0_i32 = arith.constant 0 : i32
    %c0_i32_0 = arith.constant 0 : i32
    %c0_i32_1 = arith.constant 0 : i32
    return %c0_i32, %c0_i32_0 : i32, i32
  }
  func.func @transform_8(%arg0: i32) -> (i32, i32) {
    %c0_i32 = arith.constant 0 : i32
    %c0_i32_0 = arith.constant 0 : i32
    %c0_i32_1 = arith.constant 0 : i32
    return %c0_i32, %c0_i32_0 : i32, i32
  }
  func.func @transform_9(%arg0: i32) -> (i32, i32) {
    %c0_i32 = arith.constant 0 : i32
    %c0_i32_0 = arith.constant 0 : i32
    return %c0_i32, %arg0 : i32, i32
  }
}

</mosaic_0001>

<bundles_post_ra>
// kernel: tpu_custom_call.1
= control target key start
LH: loop header
LB: loop body
LE: loop exit
PB: predicated region body
PF: predicated region fallthrough
CT: control target
= control target key end

     0   :  { %v954_v1 = vmov 2   ;;  %v955_v2 = vmov 1   ;;  %v956_v8 = vmov 0   ;;  %s1242_s0 = inlined_call_operand.vmem [shape: f32[3,128], index: 0, kind: input, shape index: {}]   ;;  %s1243_s1 = inlined_call_operand.vmem [shape: f32[64,3], index: 1, kind: input, shape index: {}]   ;;  %s1244_s2 = inlined_call_operand.vmem [shape: f32[64,1], index: 2, kind: input, shape index: {}]   ;;  %s1245_s3 = inlined_call_operand.vmem [shape: bf16[128,64], index: 3, kind: input, shape index: {}]   ;;  %s1246_s4 = inlined_call_operand.vmem [shape: f32[128,1], index: 4, kind: input, shape index: {}]   ;;  %s1247_s5 = inlined_call_operand.vmem [shape: bf16[64,128], index: 5, kind: input, shape index: {}]   ;;  %s1248_s6 = inlined_call_operand.vmem [shape: f32[64,1], index: 6, kind: input, shape index: {}]   ;;  %s1249_s7 = inlined_call_operand.vmem [shape: bf16[3,64], index: 7, kind: input, shape index: {}]   ;;  %s1250_s8 = inlined_call_operand.vmem [shape: f32[3,1], index: 8, kind: input, shape index: {}]   ;;  %s1251_s9 = inlined_call_operand.hbm [shape: f32[3,128], index: 9, kind: output, shape index: {}]  }
   0x1   :  { %v35_v0 = vld [vmem:[%s1243_s1] sm:$0xff]  ;;  %904 = vset.pattern.permute.xlu0 %v954_v1  ;;  %903 = vset.pattern.permute.xlu1 %v955_v2  ;;  %v37_v3 = vld [vmem:[%s1243_s1 + $0x10] sm:$0xff]  ;;  %v36_v4 = vld [vmem:[%s1243_s1 + $0x8] sm:$0xff] }
   0x2   :  { %148 = vperm.xlu0 %904, %v35_v0   ;;  %96 = vperm.xlu1 %903, %v35_v0   ;;  %v40_v5 = vld [vmem:[%s1243_s1 + $0x28] sm:$0xff]  ;;  %v39_v6 = vld [vmem:[%s1243_s1 + $0x20] sm:$0xff]  ;;  %v42_v7 = vld [vmem:[%s1243_s1 + $0x38] sm:$0xff] }
   0x3   :  { %v38_v9 = vld [vmem:[%s1243_s1 + $0x18] sm:$0xff] }
   0x6   :  { %156 = vperm.xlu0 %904, %v37_v3   ;;  %100 = vperm.xlu1 %903, %v36_v4  }
   0xa   :  { %168 = vperm.xlu0 %904, %v40_v5   ;;  %905 = vset.pattern.permute.xlu1 %v954_v1 }
   0xb   :  { %152 = vperm.xlu1 %905, %v36_v4  }
   0xe   :  { %912 = vset.pattern.permute.xlu0 %v955_v2 }
   0xf   :  { %112 = vperm.xlu0 %912, %v39_v6   ;;  %906 = vset.pattern.permute.xlu1 %v956_v8 }
  0x10   :  { %55 = vperm.xlu1 %906, %v37_v3  }
  0x13   :  { %124 = vperm.xlu0 %912, %v42_v7  }
  0x14   :  { %907 = vset.pattern.permute.xlu1 %v955_v2 }
  0x15   :  { %104 = vperm.xlu1 %907, %v37_v3  }
  0x16   :  { %14 = vsyncpa [#allocation3], 0  ;;  %v199_v10 = vld [vmem:[%s1244_s2] sm:$0xff]  ;;  %v200_v11 = vld [vmem:[%s1244_s2 + $0x8] sm:$0xff]  ;;  %vm419_vm0 = vcmask 523264   ;;  %v83_v51 = vlaneseq  ;;  %vm958_vm1 = vmmov 0  }
  0x17   :  { %915 = vset.pattern.permute.xlu0 %v956_v8  ;;  %v41_v12 = vld [vmem:[%s1243_s1 + $0x30] sm:$0xff]  ;;  %v203_v13 = vld [vmem:[%s1244_s2 + $0x20] sm:$0xff]  ;;  %v206_v14 = vld [vmem:[%s1244_s2 + $0x38] sm:$0xff]  ;;  %s959_s22 = smov [#allocation2]  }
  0x18   :  { %45 = vperm.xlu0 %915, %v35_v0   ;;  %v284_v15 = vld [vmem:[%s1246_s4 + $0x8] sm:$0xff]  ;;  %v286_v16 = vld [vmem:[%s1246_s4 + $0x18] sm:$0xff]  ;;  %v201_v17 = vld [vmem:[%s1244_s2 + $0x10] sm:$0xff]  ;;  %v84_v53 = vshrl.u32 %v83_v51, 7  ;;  %s779_s23 = sshll.u32 %s959_s22, 4  ;;  %s780_s23 = int_to_ptr.vmem [resolvable:$true] %s779_s23 }
  0x19   :  { %108 = vperm.xlu1 %907, %v38_v9   ;;  %v288_v18 = vld [vmem:[%s1246_s4 + $0x28] sm:$0xff]  ;;  %v202_v19 = vld [vmem:[%s1244_s2 + $0x18] sm:$0xff]  ;;  %v205_v28 = vld [vmem:[%s1244_s2 + $0x30] sm:$0xff]  ;;  %s930_s24 = scalar_lea.vmem %s780_s23, 64  ;;  %p935_p1 = scmp.lt.s32.totalorder %s780_s23, %s780_s23 }
  0x1a   :  { %v290_v20 = vld [vmem:[%s1246_s4 + $0x38] sm:$0xff]  ;;  %v292_v21 = vld [vmem:[%s1246_s4 + $0x48] sm:$0xff]  ;;  %v283_v30 = vld [vmem:[%s1246_s4] sm:$0xff]  ;;  %v129_v56 = vsub.s32 1, %v84_v53  ;;  %v85_v57 = vsub.s32 0, %v84_v53  ;;  %v181_v61 = vsub.s32 2, %v84_v53  ;;  %p931_p0 = scmp.ne.s32.totalorder %s780_s23, %s930_s24  ;;  %p936_p2 = scmp.lt.s32.totalorder %s930_s24, %s930_s24 }
  0x1b   :  { %v294_v22 = vld [vmem:[%s1246_s4 + $0x58] sm:$0xff]  ;;  %v296_v23 = vld [vmem:[%s1246_s4 + $0x68] sm:$0xff]  ;;  %v285_v32 = vld [vmem:[%s1246_s4 + $0x10] sm:$0xff] }
  0x1c   :  { %50 = vperm.xlu0 %915, %v36_v4   ;;  %v298_v24 = vld [vmem:[%s1246_s4 + $0x78] sm:$0xff]  ;;  %v574_v25 = vld [vmem:[%s1248_s6 + $0x8] sm:$0xff]  ;;  %v918_v33 = vld [vmem:[%s1245_s3] sm:$0xff]   ;;  %p937_p3 = por %p936_p2, %p935_p1 }
  0x1d   :  { %908 = vset.pattern.permute.xlu1 %v954_v1  ;;  %v204_v26 = vld [vmem:[%s1244_s2 + $0x28] sm:$0xff]  ;;  %v576_v27 = vld [vmem:[%s1248_s6 + $0x18] sm:$0xff]  ;;  %v287_v34 = vld [vmem:[%s1246_s4 + $0x20] sm:$0xff]  ;;  %845 = vmatprep.mubr.msk.bf16.mxu0 %vm419_vm0, %v918_v33 }
  0x1e   :  { %160 = vperm.xlu1 %908, %v38_v9   ;;  %v578_v29 = vld [vmem:[%s1248_s6 + $0x28] sm:$0xff]  ;;  %v580_v31 = vld [vmem:[%s1248_s6 + $0x38] sm:$0xff]  ;;  %v289_v35 = vld [vmem:[%s1246_s4 + $0x30] sm:$0xff]  ;;  %p938_p4 = pnand %p937_p3, %p931_p0 }
  0x1f   :  { %v291_v36 = vld [vmem:[%s1246_s4 + $0x40] sm:$0xff]  ;;  %v293_v37 = vld [vmem:[%s1246_s4 + $0x50] sm:$0xff] }
  0x20   :  { %60 = vperm.xlu0 %915, %v38_v9   ;;  %v295_v38 = vld [vmem:[%s1246_s4 + $0x60] sm:$0xff]  ;;  %v297_v39 = vld [vmem:[%s1246_s4 + $0x70] sm:$0xff] }
  0x21   :  { %v573_v40 = vld [vmem:[%s1248_s6] sm:$0xff]  ;;  %v575_v41 = vld [vmem:[%s1248_s6 + $0x10] sm:$0xff] }
  0x22   :  { %909 = vset.pattern.permute.xlu1 %v956_v8  ;;  %v577_v44 = vld [vmem:[%s1248_s6 + $0x20] sm:$0xff]  ;;  %v579_v47 = vld [vmem:[%s1248_s6 + $0x30] sm:$0xff] }
  0x23   :  { %209 = vperm.xlu1 %909, %v199_v10   ;;  %v723_v50 = vld [vmem:[%s1250_s8] sm:$0x7] }
  0x24   :  { %214 = vperm.xlu0 %915, %v200_v11   ;;  %v34_v58 = vld [vmem:[%s1242_s0] sm:$0x7] }
  0x25   :  { %v1154_v60 = vrot.slane %v34_v58, %v129_v56  ;;  %v1156_v62 = vrot.slane %v34_v58, %v85_v57  ;;  %v1160_v3 = vrot.slane %v34_v58, %v181_v61 }
  0x27   :  { %65 = vperm.xlu1 %909, %v39_v6  }
  0x28   :  { %75 = vperm.xlu0 %915, %v41_v12  }
  0x2b   :  { %70 = vperm.xlu1 %909, %v40_v5  }
  0x2c   :  { %229 = vperm.xlu0 %915, %v203_v13  }
  0x2f   :  { %910 = vset.pattern.permute.xlu1 %v955_v2 }
  0x30   :  { %244 = vperm.xlu0 %915, %v206_v14   ;;  %116 = vperm.xlu1 %910, %v40_v5  }
  0x34   :  { %306 = vperm.xlu0 %915, %v284_v15   ;;  %911 = vset.pattern.permute.xlu1 %v954_v1 }
  0x35   :  { %164 = vperm.xlu1 %911, %v39_v6  }
  0x38   :  { %316 = vperm.xlu0 %915, %v286_v16  }
  0x39   :  { %913 = vset.pattern.permute.xlu1 %v956_v8 }
  0x3a   :  { %219 = vperm.xlu1 %913, %v201_v17  }
  0x3c   :  { %326 = vperm.xlu0 %915, %v288_v18  }
  0x3e   :  { %224 = vperm.xlu1 %913, %v202_v19  }
  0x40   :  { %336 = vperm.xlu0 %915, %v290_v20  }
  0x42   :  { %80 = vperm.xlu1 %913, %v42_v7  }
  0x44   :  { %346 = vperm.xlu0 %915, %v292_v21  }
  0x46   :  { %914 = vset.pattern.permute.xlu1 %v955_v2 }
  0x47   :  { %120 = vperm.xlu1 %914, %v41_v12  }
  0x48   :  { %356 = vperm.xlu0 %915, %v294_v22  }
  0x4b   :  { %916 = vset.pattern.permute.xlu1 %v954_v1 }
  0x4c   :  { %366 = vperm.xlu0 %915, %v296_v23   ;;  %172 = vperm.xlu1 %916, %v41_v12  }
  0x50   :  { %376 = vperm.xlu0 %915, %v298_v24   ;;  %176 = vperm.xlu1 %916, %v42_v7  }
  0x54   :  { %588 = vperm.xlu0 %915, %v574_v25   ;;  %917 = vset.pattern.permute.xlu1 %v956_v8 }
  0x55   :  { %234 = vperm.xlu1 %917, %v204_v26  }
  0x58   :  { %598 = vperm.xlu0 %915, %v576_v27  }
  0x59   :  { %239 = vperm.xlu1 %917, %v205_v28  }
  0x5c   :  { %608 = vperm.xlu0 %915, %v578_v29  }
  0x5d   :  { %301 = vperm.xlu1 %917, %v283_v30  }
  0x60   :  { %618 = vperm.xlu0 %915, %v580_v31  }
  0x61   :  { %311 = vperm.xlu1 %917, %v285_v32  }
  0x65   :  { %321 = vperm.xlu1 %917, %v287_v34  }
  0x69   :  { %331 = vperm.xlu1 %917, %v289_v35  }
  0x6d   :  { %341 = vperm.xlu1 %917, %v291_v36  }
  0x71   :  { %351 = vperm.xlu1 %917, %v293_v37  }
  0x75   :  { %361 = vperm.xlu1 %917, %v295_v38  }
  0x79   :  { %371 = vperm.xlu1 %917, %v297_v39  }
  0x7d   :  { %583 = vperm.xlu1 %917, %v573_v40  }
  0x81   :  { %593 = vperm.xlu1 %917, %v575_v41   ;;  %v97_v42 = vpop.permute.xlu1 %96  ;;  %v149_v43 = vpop.permute.xlu0 %148 }
  0x82   :  { %v131_v2 = vmul.f32 %v1154_v60, %v97_v42  ;;  %v183_v7 = vmul.f32 %v1160_v3, %v149_v43 }
  0x85   :  { %603 = vperm.xlu1 %917, %v577_v44   ;;  %v101_v45 = vpop.permute.xlu1 %100  ;;  %v157_v46 = vpop.permute.xlu0 %156 }
  0x86   :  { %v132_v5 = vmul.f32 %v1154_v60, %v101_v45  ;;  %v185_v29 = vmul.f32 %v1160_v3, %v157_v46 }
  0x89   :  { %613 = vperm.xlu1 %917, %v579_v47   ;;  %v1144_v48 = vpop.permute.xlu0 %168 }
  0x8a   :  { %v153_v49 = vpop.permute.xlu1 %152 }
  0x8b   :  { %v184_v12 = vmul.f32 %v1160_v3, %v153_v49 }
  0x8d   :  { %726 = vperm.xlu1 %917, %v723_v50  }
  0x8e   :  { %v113_v52 = vpop.permute.xlu0 %112 }
  0x8f   :  { %v56_v54 = vpop.permute.xlu1 %55  ;;  %v135_v45 = vmul.f32 %v1154_v60, %v113_v52 }
  0x90   :  { %v89_v26 = vmul.f32 %v1156_v62, %v56_v54 }
  0x92   :  { %v1149_v55 = vpop.permute.xlu0 %124 }
  0x93   :  { %v138_v57 = vmul.f32 %v1154_v60, %v1149_v55 }
  0x94   :  { %v105_v59 = vpop.permute.xlu1 %104 }
  0x95   :  { %v133_v25 = vmul.f32 %v1154_v60, %v105_v59 }
  0x97   :  { %v46_v63 = vpop.permute.xlu0 %45  ;;  %v141_v30 = vadd.f32 %v133_v25, %v89_v26  ;;  %v926_v25 = vld [vmem:[%s1247_s5] sm:$0xff]  }
  0x98   :  { %v109_v0 = vpop.permute.xlu1 %108  ;;  %v87_v1 = vmul.f32 %v1156_v62, %v46_v63  ;;  %877 = vmatprep.mubr.bf16.mxu1 %v926_v25 }
  0x99   :  { %v134_v31 = vmul.f32 %v1154_v60, %v109_v0  ;;  %v193_v35 = vadd.f32 %v185_v29, %v141_v30  ;;  %v188_v0 = vmul.f32 %v1160_v3, %v1144_v48 }
  0x9a   :  { %v139_v8 = vadd.f32 %v131_v2, %v87_v1 }
  0x9b   :  { %v51_v4 = vpop.permute.xlu0 %50 }
  0x9c   :  { %v88_v6 = vmul.f32 %v1156_v62, %v51_v4  ;;  %v191_v13 = vadd.f32 %v183_v7, %v139_v8 }
  0x9d   :  { %v161_v9 = vpop.permute.xlu1 %160 }
  0x9e   :  { %v140_v10 = vadd.f32 %v132_v5, %v88_v6  ;;  %v186_v34 = vmul.f32 %v1160_v3, %v161_v9 }
  0x9f   :  { %v61_v11 = vpop.permute.xlu0 %60 }
  0xa0   :  { %v192_v15 = vadd.f32 %v184_v12, %v140_v10  ;;  %v90_v27 = vmul.f32 %v1156_v62, %v61_v11 }
  0xa2   :  { %v210_v14 = vpop.permute.xlu1 %209  ;;  %v142_v32 = vadd.f32 %v134_v31, %v90_v27 }
  0xa3   :  { %v247_v16 = vadd.f32 %v210_v14, %v191_v13  ;;  %v215_v17 = vpop.permute.xlu0 %214 }
  0xa4   :  { %v248_v18 = vadd.f32 %v215_v17, %v192_v15  ;;  %v194_v37 = vadd.f32 %v186_v34, %v142_v32 }
  0xa5   :  { %v255_v19 = vmax.f32 %v247_v16, 0.0 }
  0xa6   :  { %v256_v20 = vmax.f32 %v248_v18, 0.0  ;;  %v66_v21 = vpop.permute.xlu1 %65 }
  0xa7   :  { %v91_v46 = vmul.f32 %v1156_v62, %v66_v21  ;;  %v76_v47 = vpop.permute.xlu0 %75  ;;  %v922_v21 = vld [vmem:[%s1245_s3 + $0x20] sm:$0xff]  }
  0xa8   :  { %v279_v22 = vpack.c.bf16 %v256_v20, %v255_v19  ;;  %v93_v4 = vmul.f32 %v1156_v62, %v76_v47  ;;  %v920_v19 = vld [vmem:[%s1245_s3 + $0x10] sm:$0xff]   ;;  %v921_v20 = vld [vmem:[%s1245_s3 + $0x18] sm:$0xff]  }
  0xa9   :  { %v143_v53 = vadd.f32 %v135_v45, %v91_v46 }
  0xaa   :  { %v71_v23 = vpop.permute.xlu1 %70  ;;  %837 = vmatprep.subr.bf16.mxu0 %v279_v22 }
  0xab   :  { %838 = vmatpush3.bf16.msra.mxu0 %v279_v22  ;;  %v92_v54 = vmul.f32 %v1156_v62, %v71_v23  ;;  %v230_v52 = vpop.permute.xlu0 %229  ;;  %v923_v22 = vld [vmem:[%s1245_s3 + $0x28] sm:$0xff]   ;;  %v924_v23 = vld [vmem:[%s1245_s3 + $0x30] sm:$0xff]  }
  0xaf   :  { %v117_v24 = vpop.permute.xlu1 %116  ;;  %v245_v11 = vpop.permute.xlu0 %244 }
  0xb0   :  { %v136_v49 = vmul.f32 %v1154_v60, %v117_v24  ;;  %v925_v24 = vld [vmem:[%s1245_s3 + $0x38] sm:$0xff]  }
  0xb2   :  { %v144_v58 = vadd.f32 %v136_v49, %v92_v54 }
  0xb3   :  { %v307_v27 = vpop.permute.xlu0 %306 }
  0xb4   :  { %v165_v28 = vpop.permute.xlu1 %164  ;;  %v196_v8 = vadd.f32 %v188_v0, %v144_v58 }
  0xb5   :  { %v187_v50 = vmul.f32 %v1160_v3, %v165_v28 }
  0xb7   :  { %v195_v59 = vadd.f32 %v187_v50, %v143_v53  ;;  %v317_v29 = vpop.permute.xlu0 %316 }
  0xb9   :  { %v220_v33 = vpop.permute.xlu1 %219  ;;  %v251_v5 = vadd.f32 %v230_v52, %v195_v59 }
  0xba   :  { %v249_v36 = vadd.f32 %v220_v33, %v193_v35 }
  0xbb   :  { %v259_v13 = vmax.f32 %v251_v5, 0.0  ;;  %v327_v31 = vpop.permute.xlu0 %326 }
  0xbc   :  { %v257_v40 = vmax.f32 %v249_v36, 0.0 }
  0xbd   :  { %v225_v38 = vpop.permute.xlu1 %224 }
  0xbe   :  { %v250_v39 = vadd.f32 %v225_v38, %v194_v37 }
  0xbf   :  { %v337_v36 = vpop.permute.xlu0 %336 }
  0xc0   :  { %v258_v41 = vmax.f32 %v250_v39, 0.0 }
  0xc1   :  { %v81_v42 = vpop.permute.xlu1 %80 }
  0xc2   :  { %v280_v43 = vpack.c.bf16 %v258_v41, %v257_v40  ;;  %v94_v56 = vmul.f32 %v1156_v62, %v81_v42 }
  0xc3   :  { %v347_v49 = vpop.permute.xlu0 %346 }
  0xc4   :  { %839 = vmatprep.subr.bf16.mxu0 %v280_v43  ;;  %v146_v1 = vadd.f32 %v138_v57, %v94_v56 }
  0xc5   :  { %840 = vmatpush3.bf16.msra.mxu0 %v280_v43 }
  0xc6   :  { %v121_v44 = vpop.permute.xlu1 %120 }
  0xc7   :  { %v137_v2 = vmul.f32 %v1154_v60, %v121_v44 }
  0xc9   :  { %v145_v9 = vadd.f32 %v137_v2, %v93_v4 }
  0xcb   :  { %v173_v51 = vpop.permute.xlu1 %172 }
  0xcc   :  { %v189_v6 = vmul.f32 %v1160_v3, %v173_v51 }
  0xce   :  { %v197_v15 = vadd.f32 %v189_v6, %v145_v9 }
  0xcf   :  { %v177_v61 = vpop.permute.xlu1 %176 }
  0xd0   :  { %v190_v63 = vmul.f32 %v1160_v3, %v177_v61  ;;  %v919_v3 = vld [vmem:[%s1245_s3 + $0x8] sm:$0xff]  }
  0xd2   :  { %v198_v7 = vadd.f32 %v190_v63, %v146_v1  ;;  %v357_v1 = vpop.permute.xlu0 %356 }
  0xd4   :  { %v235_v55 = vpop.permute.xlu1 %234  ;;  %v254_v12 = vadd.f32 %v245_v11, %v198_v7 }
  0xd5   :  { %v252_v10 = vadd.f32 %v235_v55, %v196_v8 }
  0xd6   :  { %v262_v60 = vmax.f32 %v254_v12, 0.0 }
  0xd7   :  { %v260_v14 = vmax.f32 %v252_v10, 0.0 }
  0xd8   :  { %v240_v16 = vpop.permute.xlu1 %239 }
  0xd9   :  { %v281_v48 = vpack.c.bf16 %v260_v14, %v259_v13  ;;  %v253_v17 = vadd.f32 %v240_v16, %v197_v15  ;;  %v367_v14 = vpop.permute.xlu0 %366 }
  0xdb   :  { %v261_v18 = vmax.f32 %v253_v17, 0.0  ;;  %841 = vmatprep.subr.bf16.mxu0 %v281_v48 }
  0xdc   :  { %842 = vmatpush3.bf16.msra.mxu0 %v281_v48  ;;  %v302_v26 = vpop.permute.xlu1 %301 }
  0xdd   :  { %v282_v62 = vpack.c.bf16 %v262_v60, %v261_v18 }
  0xdf   :  { %843 = vmatprep.subr.bf16.mxu0 %v282_v62 }
  0xe0   :  { %844 = vmatpush3.bf16.msra.mxu0 %v282_v62  ;;  %v312_v28 = vpop.permute.xlu1 %311 }
  0xe3   :  { %846 = vmatmul.mubr.msk.bf16.vlgmr.msra.gmra.mrb[0].mxu0 %vm419_vm0, %v919_v3 }
  0xe4   :  { %849 = vmatprep.mubr.msk.bf16.mxu0 %vm419_vm0, %v920_v19  ;;  %v322_v30 = vpop.permute.xlu1 %321 }
  0xe8   :  { %v332_v32 = vpop.permute.xlu1 %331 }
  0xeb   :  { %850 = vmatmul.mubr.msk.bf16.gmra.mrb[4].mxu0 %vm419_vm0, %v921_v20 }
  0xec   :  { %853 = vmatprep.mubr.msk.bf16.mxu0 %vm419_vm0, %v922_v21  ;;  %v342_v44 = vpop.permute.xlu1 %341 }
  0xf0   :  { %v352_v61 = vpop.permute.xlu1 %351 }
  0xf3   :  { %854 = vmatmul.mubr.msk.bf16.gmra.mrb[8].mxu0 %vm419_vm0, %v923_v22  ;;  %v377_v22 = vpop.permute.xlu0 %376 }
  0xf4   :  { %857 = vmatprep.mubr.msk.bf16.mxu0 %vm419_vm0, %v924_v23  ;;  %v362_v9 = vpop.permute.xlu1 %361 }
  0xf8   :  { %v372_v62 = vpop.permute.xlu1 %371 }
  0xfb   :  { %858 = vmatmul.mubr.msk.bf16.gmra.mrb[12].mxu0 %vm419_vm0, %v925_v24 }
 0x1b6   :  { %v847_v33 = vpop.f32.mrb[0].mxu0 }
 0x1b7   :  { %v487_v34 = vadd.f32 %v847_v33, %v312_v28  ;;  %v478_v35 = vpop.f32.mrb[1].mxu0 }
 0x1b8   :  { %v479_v37 = vadd.f32 %v478_v35, %v302_v26  ;;  %v848_v38 = vpop.f32.mrb[2].mxu0  ;;  %v928_v35 = vld [vmem:[%s1247_s5 + $0x10] sm:$0xff]  }
 0x1b9   :  { %v490_v39 = vadd.f32 %v848_v38, %v317_v29  ;;  %v481_v40 = vpop.f32.mrb[3].mxu0  ;;  %v543_v42 = vmax.f32 %v487_v34, 0.0  ;;  %v927_v34 = vld [vmem:[%s1247_s5 + $0x8] sm:$0xff]   ;;  %v584_v38 = vpop.permute.xlu1 %583 }
 0x1ba   :  { %v482_v41 = vadd.f32 %v481_v40, %v307_v27  ;;  %v541_v45 = vmax.f32 %v479_v37, 0.0  ;;  %v957_v37 = vmov 0.0  }
 0x1bb   :  { %v544_v43 = vmax.f32 %v490_v39, 0.0  ;;  %885 = vmatprep.subr.bf16.mxu0 %v957_v37  ;;  %893 = vmatprep.mubr.msk.bf16.mxu0 %vm958_vm1, %v957_v37  ;;  %v589_v39 = vpop.permute.xlu0 %588 }
 0x1bc   :  { %v542_v46 = vmax.f32 %v482_v41, 0.0 }
 0x1bd   :  { %v566_v47 = vpack.c.bf16 %v544_v43, %v543_v42  ;;  %v594_v40 = vpop.permute.xlu1 %593 }
 0x1be   :  { %v851_v50 = vpop.f32.mrb[4].mxu0  ;;  %v565_v51 = vpack.c.bf16 %v542_v46, %v541_v45 }
 0x1bf   :  { %v503_v53 = vadd.f32 %v851_v50, %v332_v32  ;;  %v494_v54 = vpop.f32.mrb[5].mxu0  ;;  %v599_v41 = vpop.permute.xlu0 %598 }
 0x1c0   :  { %v495_v56 = vadd.f32 %v494_v54, %v322_v30  ;;  %v852_v57 = vpop.f32.mrb[6].mxu0  ;;  %861 = vmatprep.subr.bf16.mxu1 %v565_v51 }
 0x1c1   :  { %v506_v58 = vadd.f32 %v852_v57, %v337_v36  ;;  %v497_v59 = vpop.f32.mrb[7].mxu0  ;;  %862 = vmatpush3.bf16.msra.mxu1 %v565_v51  ;;  %v547_v63 = vmax.f32 %v503_v53, 0.0  ;;  %v929_v36 = vld [vmem:[%s1247_s5 + $0x18] sm:$0xff]   ;;  %v604_v45 = vpop.permute.xlu1 %603 }
 0x1c2   :  { %v498_v52 = vadd.f32 %v497_v59, %v327_v31  ;;  %863 = vmatprep.subr.bf16.mxu1 %v566_v47  ;;  %v545_v2 = vmax.f32 %v495_v56, 0.0 }
 0x1c3   :  { %v548_v0 = vmax.f32 %v506_v58, 0.0  ;;  %v609_v51 = vpop.permute.xlu0 %608 }
 0x1c4   :  { %v546_v4 = vmax.f32 %v498_v52, 0.0 }
 0x1c5   :  { %v568_v5 = vpack.c.bf16 %v548_v0, %v547_v63  ;;  %864 = vmatpush3.bf16.msra.mxu1 %v566_v47 }
 0x1c6   :  { %v567_v6 = vpack.c.bf16 %v546_v4, %v545_v2  ;;  %v855_v7 = vpop.f32.mrb[8].mxu0 }
 0x1c7   :  { %v519_v8 = vadd.f32 %v855_v7, %v352_v61  ;;  %v510_v55 = vpop.f32.mrb[9].mxu0  ;;  %v614_v61 = vpop.permute.xlu1 %613 }
 0x1c8   :  { %v511_v10 = vadd.f32 %v510_v55, %v342_v44  ;;  %v856_v11 = vpop.f32.mrb[10].mxu0  ;;  %865 = vmatprep.subr.bf16.mxu1 %v567_v6  ;;  %v619_v2 = vpop.permute.xlu0 %618 }
 0x1c9   :  { %v522_v12 = vadd.f32 %v856_v11, %v357_v1  ;;  %v513_v13 = vpop.f32.mrb[11].mxu0  ;;  %866 = vmatpush3.bf16.msra.mxu1 %v567_v6  ;;  %v551_v16 = vmax.f32 %v519_v8, 0.0 }
 0x1ca   :  { %v514_v15 = vadd.f32 %v513_v13, %v347_v49  ;;  %867 = vmatprep.subr.bf16.mxu1 %v568_v5  ;;  %v549_v17 = vmax.f32 %v511_v10, 0.0 }
 0x1cb   :  { %v552_v48 = vmax.f32 %v522_v12, 0.0 }
 0x1cc   :  { %v550_v18 = vmax.f32 %v514_v15, 0.0  ;;  %v727_v15 = vpop.permute.xlu1 %726 }
 0x1cd   :  { %v570_v60 = vpack.c.bf16 %v552_v48, %v551_v16  ;;  %868 = vmatpush3.bf16.msra.mxu1 %v568_v5 }
 0x1ce   :  { %v569_v3 = vpack.c.bf16 %v550_v18, %v549_v17  ;;  %v859_v19 = vpop.f32.mrb[12].mxu0 }
 0x1cf   :  { %v535_v20 = vadd.f32 %v859_v19, %v372_v62  ;;  %v526_v21 = vpop.f32.mrb[13].mxu0 }
 0x1d0   :  { %v527_v23 = vadd.f32 %v526_v21, %v362_v9  ;;  %v860_v24 = vpop.f32.mrb[14].mxu0  ;;  %869 = vmatprep.subr.bf16.mxu1 %v569_v3 }
 0x1d1   :  { %v538_v25 = vadd.f32 %v860_v24, %v377_v22  ;;  %v529_v26 = vpop.f32.mrb[15].mxu0  ;;  %870 = vmatpush3.bf16.msra.mxu1 %v569_v3  ;;  %v555_v28 = vmax.f32 %v535_v20, 0.0 }
 0x1d2   :  { %v530_v27 = vadd.f32 %v529_v26, %v367_v14  ;;  %871 = vmatprep.subr.bf16.mxu1 %v570_v60  ;;  %v553_v30 = vmax.f32 %v527_v23, 0.0  ;;  %v718_v14 = vld [vmem:[%s1249_s7] sm:$0x3] }
 0x1d3   :  { %v556_v29 = vmax.f32 %v538_v25, 0.0 }
 0x1d4   :  { %v554_v31 = vmax.f32 %v530_v27, 0.0 }
 0x1d5   :  { %v572_v32 = vpack.c.bf16 %v556_v29, %v555_v28  ;;  %872 = vmatpush3.bf16.msra.mxu1 %v570_v60 }
 0x1d6   :  { %v571_v33 = vpack.c.bf16 %v554_v31, %v553_v30 }
 0x1d8   :  { %873 = vmatprep.subr.bf16.mxu1 %v571_v33 }
 0x1d9   :  { %874 = vmatpush3.bf16.msra.mxu1 %v571_v33 }
 0x1da   :  { %875 = vmatprep.subr.bf16.mxu1 %v572_v32 }
 0x1dd   :  { %876 = vmatpush3.bf16.msra.mxu1 %v572_v32 }
 0x1e0   :  { %878 = vmatmul.mubr.bf16.vlgmr.msra.gmra.mrb[0].mxu1 %v927_v34 }
 0x1e1   :  { %881 = vmatprep.mubr.bf16.mxu1 %v928_v35 }
 0x1e8   :  { %882 = vmatmul.mubr.bf16.gmra.mrb[4].mxu1 %v929_v36 }
 0x2b3   :  { %v879_v42 = vpop.f32.mrb[0].mxu1 }
 0x2b4   :  { %v688_v43 = vadd.f32 %v879_v42, %v594_v40  ;;  %v679_v44 = vpop.f32.mrb[1].mxu1 }
 0x2b5   :  { %v680_v46 = vadd.f32 %v679_v44, %v584_v38  ;;  %v880_v47 = vpop.f32.mrb[2].mxu1 }
 0x2b6   :  { %v691_v49 = vadd.f32 %v880_v47, %v599_v41  ;;  %v682_v50 = vpop.f32.mrb[3].mxu1  ;;  %v712_v54 = vmax.f32 %v688_v43, 0.0 }
 0x2b7   :  { %v683_v53 = vadd.f32 %v682_v50, %v589_v39  ;;  %v710_v57 = vmax.f32 %v680_v46, 0.0 }
 0x2b8   :  { %v713_v56 = vmax.f32 %v691_v49, 0.0 }
 0x2b9   :  { %v711_v58 = vmax.f32 %v683_v53, 0.0 }
 0x2ba   :  { %v720_v59 = vpack.c.bf16 %v713_v56, %v712_v54 }
 0x2bb   :  { %v719_v52 = vpack.c.bf16 %v711_v58, %v710_v57  ;;  %v883_v63 = vpop.f32.mrb[4].mxu1 }
 0x2bc   :  { %v704_v0 = vadd.f32 %v883_v63, %v614_v61  ;;  %v695_v1 = vpop.f32.mrb[5].mxu1 }
 0x2bd   :  { %v696_v4 = vadd.f32 %v695_v1, %v604_v45  ;;  %v884_v5 = vpop.f32.mrb[6].mxu1  ;;  %886 = vmatpush3.bf16.msra.mxu0 %v719_v52 }
 0x2be   :  { %v707_v6 = vadd.f32 %v884_v5, %v619_v2  ;;  %v698_v7 = vpop.f32.mrb[7].mxu1  ;;  %887 = vmatprep.subr.bf16.mxu0 %v957_v37  ;;  %v716_v55 = vmax.f32 %v704_v0, 0.0 }
 0x2bf   :  { %v699_v8 = vadd.f32 %v698_v7, %v609_v51  ;;  %v714_v10 = vmax.f32 %v696_v4, 0.0 }
 0x2c0   :  { %v717_v9 = vmax.f32 %v707_v6, 0.0 }
 0x2c1   :  { %v715_v11 = vmax.f32 %v699_v8, 0.0  ;;  %888 = vmatpush3.bf16.msra.mxu0 %v720_v59 }
 0x2c2   :  { %v722_v12 = vpack.c.bf16 %v717_v9, %v716_v55  ;;  %889 = vmatprep.subr.bf16.mxu0 %v957_v37 }
 0x2c3   :  { %v721_v13 = vpack.c.bf16 %v715_v11, %v714_v10 }
 0x2c5   :  { %890 = vmatpush3.bf16.msra.mxu0 %v721_v13 }
 0x2c6   :  { %891 = vmatprep.subr.bf16.mxu0 %v957_v37 }
 0x2c9   :  { %892 = vmatpush3.bf16.msra.mxu0 %v722_v12 }
 0x2cc   :  { %894 = vmatmul.mubr.msk.bf16.vlgmr.msra.gmra.mrb[16].mxu0 %vm419_vm0, %v718_v14 }
 0x39f   :  { %v766_v16 = vpop.f32.mrb[16].mxu0 }
 0x3a0   :  { %v767_v48 = vadd.f32 %v766_v16, %v727_v15  ;;  %v895_v17 = vpop.f32.mrb[17].mxu0 }
 0x3a1   :  { %v769_v18 = vpop.f32.mrb[18].mxu0 }
 0x3a2   :  { %772 = vst [vmem:[#allocation2] sm:$0x7] %v767_v48  ;;  %v896_v60 = vpop.f32.mrb[19].mxu0 }
 0x3a3   :  { %941 = shalt.err (!%p938_p4)
}
 0x3a4   :  { %s942_s25 = scalar_lea.hbm %s1251_s9, 64 }
 0x3a5   :  { %p943_p5 = scmp.ne.s32.totalorder %s1251_s9, %s942_s25  ;;  %p946_p6 = scmp.lt.u32.totalorder %s942_s25, %s1251_s9 }
 0x3a7   :  { %p948_p7 = pnand %p946_p6, %p943_p5 }
 0x3a9   :  { %951 = shalt.err (!%p948_p7)
}
 0x3aa   :  { %782 = dma.vmem_to_hbm [thread:$0]  %s780_s23, 64, %s1251_s9, [#allocation3]  }
 0x3ab   :  { %952 = dma.done.wait [#allocation3], 64  }
 0x3ac   :  { %953 = vsyncadd [#allocation3], 4294967232 }
 0x3ad   :  { %786 = vsyncpa [#allocation3], 1 }

</bundles_post_ra>
